<compile_context>
chip_gen: v7x
topology: tpu7x:2x2x1
jax: 0.10.0
libtpu: 0.0.40
codegen_flags: <defaults>
</compile_context>

<pallas_src>
import functools

import jax
import jax.numpy as jnp
from jax.experimental import pallas as pl
from jax.experimental.pallas import tpu as pltpu

BN_EPS = 1e-5
_NUM_CORES = 2           # phase-1 megacore split on v7x; harmless outer loop on v5e/v6e
_PHASE2_MAX_TILE = 2048  # phase 2 is HBM-bound elementwise: big lane-dense tiles


def _round_up(x, m):
    return ((x + m - 1) // m) * m


def _vmem_limit_bytes():
    """Generation-aware scoped-VMEM cap (v7x: 64 MiB physical, v5e/v6e: 128 MiB)."""
    cap = 128 * 1024 * 1024
    try:
        cap = int(getattr(pltpu.get_tpu_info(), "vmem_capacity_bytes", cap))
    except Exception:
        pass
    return max(32 * 1024 * 1024, min((cap * 3) // 4, 96 * 1024 * 1024))


def _phase2_tile(ohw_pad, cap=_PHASE2_MAX_TILE):
    """Largest multiple of 128 that divides ohw_pad and is <= cap."""
    best, t = 128, 128
    while t <= min(ohw_pad, cap):
        if ohw_pad % t == 0:
            best = t
        t += 128
    return best


def _conv_stats_kernel(w_ref, p_ref, conv_ref, sum_ref, ssq_ref):
    """Phase 1: conv-as-matmul (bf16 in, f32 acc) + per-channel sum / sumsq.

    Grid: (core, image, hw_tile).
    w_ref:    (c_pad, K)      bf16   same block every step
    p_ref:    (1, K, TM)      bf16   one per-image hw tile per step
    conv_ref: (1, c_pad, TM)  bf16   raw conv output tile (halved HBM traffic)
    sum_ref:  (1, c_pad, 1)   f32    per-core resident accumulator
    ssq_ref:  (1, c_pad, 1)   f32    per-core resident accumulator
    """
    first = jnp.logical_and(pl.program_id(1) == 0, pl.program_id(2) == 0)

    acc = jnp.dot(w_ref[...], p_ref[0], preferred_element_type=jnp.float32)  # MXU
    conv_ref[0] = acc.astype(conv_ref.dtype)

    @pl.when(first)
    def _():
        sum_ref[...] = jnp.zeros_like(sum_ref)
        ssq_ref[...] = jnp.zeros_like(ssq_ref)

    # Single-pass statistics from the f32 accumulator; zero-padded hw columns
    # and zero-padded channel rows contribute nothing.  Reduce in 256-lane
    # chunks so acc*acc never materializes as a second full (c_pad, TM) f32
    # temporary (bounds vreg pressure at large tiles).
    c_pad, tm = acc.shape
    chunk = min(256, tm)
    part_sum = jnp.zeros((c_pad, 1), jnp.float32)
    part_ssq = jnp.zeros((c_pad, 1), jnp.float32)
    for s0 in range(0, tm, chunk):          # static unroll
        blk = acc[:, s0:s0 + chunk]
        part_sum = part_sum + jnp.sum(blk, axis=-1, keepdims=True)
        part_ssq = part_ssq + jnp.sum(blk * blk, axis=-1, keepdims=True)
    sum_ref[0] += part_sum
    ssq_ref[0] += part_ssq


def _bn_relu_kernel(scale_ref, shift_ref, conv_ref, out_ref):
    """Phase 2: y = max(conv * scale + shift, 0), written straight in NCHW order."""
    c_out = out_ref.shape[1]
    y = conv_ref[0].astype(jnp.float32) * scale_ref[...] + shift_ref[...]
    out_ref[0] = jnp.maximum(y, 0.0)[:c_out, :].astype(out_ref.dtype)


def _im2col_per_image(x, kh, kw, stride, padding, ohw_pad):
    """NCHW x -> (N, C*KH*KW, ohw_pad) patches, per-image zero-padded hw axis.

    Row order (c, i, j) matches weight.reshape(C_out, C_in*KH*KW).
    """
    if padding:
        x = jnp.pad(x, ((0, 0), (0, 0), (padding, padding), (padding, padding)))
    n, c, h, w = x.shape
    oh = (h - kh) // stride + 1
    ow = (w - kw) // stride + 1
    cols = []
    for i in range(kh):
        for j in range(kw):
            cols.append(x[:, :, i:i + stride * oh:stride, j:j + stride * ow:stride])
    patches = jnp.stack(cols, axis=2)                     # (N, C, KH*KW, OH, OW)
    patches = patches.reshape(n, c * kh * kw, oh * ow)    # (N, K, OH*OW)
    return jnp.pad(patches, ((0, 0), (0, 0), (0, ohw_pad - oh * ow)))


@functools.partial(jax.jit,
                   static_argnames=("kernel_size", "stride", "padding", "block_m"))
def conv2d_block(x, weight, gamma, beta, *, kernel_size, stride, padding=0,
                 block_m=512):
    """Forward of Conv2dBlock (batchnorm=True, training-mode batch stats).

    x:      (N, C_in, H, W)        NCHW, float32
    weight: (C_out, C_in, KH, KW)  PyTorch Conv2d layout (bias=False)
    gamma, beta: (C_out,)          BatchNorm2d affine params
    returns (N, C_out, OH, OW)     NCHW, float32
    """
    n, c_in, h, w = x.shape
    c_out = weight.shape[0]
    kh = kw = kernel_size
    assert block_m % 128 == 0, "block_m must be a multiple of 128 (lane width)"

    oh = (h + 2 * padding - kh) // stride + 1
    ow = (w + 2 * padding - kw) // stride + 1
    ohw = oh * ow
    k = c_in * kh * kw

    # Phase-1 hw tile; cap at one (128-rounded) image so small images are not
    # over-padded.  ohw is padded per image to NUM_CORES*tm1 so every tile is
    # dense and the per-core split is even.
    tm1 = min(block_m, _round_up(ohw, 128))
    ohw_pad = _round_up(ohw, _NUM_CORES * tm1)
    tpc = (ohw_pad // tm1) // _NUM_CORES          # hw tiles per core per image

    c_pad = _round_up(c_out, 16)                  # sublane-align (bf16-friendly)
    vmem_limit = _vmem_limit_bytes()

    # bf16 MXU inputs emitted directly (no separate f32 materialize+cast pass).
    x_bf16 = x.astype(jnp.bfloat16)
    patches = _im2col_per_image(x_bf16, kh, kw, stride, padding, ohw_pad)  # (N,K,ohw_pad)
    w_mat = jnp.pad(weight.reshape(c_out, k).astype(jnp.bfloat16),
                    ((0, c_pad - c_out), (0, 0)))                          # (c_pad,K)
    # TODO(synk): build patch tiles inside the kernel from shifted NHWC slices
    # (in-kernel im2col) to remove the KH*KW-fold HBM read amplification.
    # TODO(synk): for very large K (deep layers) add a K reduction grid axis
    # with an f32 VMEM accumulator instead of keeping full-K blocks resident.

    # ---- Phase 1: conv matmul + per-core per-channel sum / sum-of-squares ---
    conv, csum, cssq = pl.pallas_call(
        _conv_stats_kernel,
        out_shape=(jax.ShapeDtypeStruct((n, c_pad, ohw_pad), jnp.bfloat16),
                   jax.ShapeDtypeStruct((_NUM_CORES, c_pad, 1), jnp.float32),
                   jax.ShapeDtypeStruct((_NUM_CORES, c_pad, 1), jnp.float32)),
        grid_spec=pltpu.PrefetchScalarGridSpec(
            num_scalar_prefetch=0,
            grid=(_NUM_CORES, n, tpc),
            in_specs=[pl.BlockSpec((c_pad, k), lambda c, b, t: (0, 0)),
                      pl.BlockSpec((1, k, tm1),
                                   lambda c, b, t: (b, 0, c * tpc + t))],
            out_specs=(pl.BlockSpec((1, c_pad, tm1),
                                    lambda c, b, t: (b, 0, c * tpc + t)),
                       pl.BlockSpec((1, c_pad, 1), lambda c, b, t: (c, 0, 0)),
                       pl.BlockSpec((1, c_pad, 1), lambda c, b, t: (c, 0, 0)))),
        compiler_params=pltpu.CompilerParams(
            dimension_semantics=("parallel", "arbitrary", "arbitrary"),
            vmem_limit_bytes=vmem_limit),
    )(w_mat, patches)

    # ---- Tiny per-channel BN parameter math (C_out scalars, f32) ------------
    m_true = n * ohw
    total_sum = jnp.sum(csum, axis=0)[:, 0]       # reduce the per-core partials
    total_ssq = jnp.sum(cssq, axis=0)[:, 0]
    mean = total_sum / m_true
    var = jnp.maximum(total_ssq / m_true - mean * mean, 0.0)  # biased batch var
    gamma_p = jnp.pad(gamma.astype(jnp.float32), (0, c_pad - c_out))
    beta_p = jnp.pad(beta.astype(jnp.float32), (0, c_pad - c_out))
    rstd = jax.lax.rsqrt(var + BN_EPS)
    scale = (gamma_p * rstd).reshape(c_pad, 1)
    shift = (beta_p - mean * gamma_p * rstd).reshape(c_pad, 1)

    # ---- Phase 2: y = max(conv*scale + shift, 0), output already NCHW-major -
    tm2 = _phase2_tile(ohw_pad)
    out3d = pl.pallas_call(
        _bn_relu_kernel,
        out_shape=jax.ShapeDtypeStruct((n, c_out, ohw_pad), jnp.float32),
        grid_spec=pltpu.PrefetchScalarGridSpec(
            num_scalar_prefetch=0,
            grid=(n, ohw_pad // tm2),
            in_specs=[pl.BlockSpec((c_pad, 1), lambda b, t: (0, 0)),
                      pl.BlockSpec((c_pad, 1), lambda b, t: (0, 0)),
                      pl.BlockSpec((1, c_pad, tm2), lambda b, t: (b, 0, t))],
            out_specs=pl.BlockSpec((1, c_out, tm2), lambda b, t: (b, 0, t))),
        compiler_params=pltpu.CompilerParams(
            dimension_semantics=("parallel", "parallel"),
            vmem_limit_bytes=vmem_limit),
    )(scale, shift, conv)

    # Channel-major per image already -> NCHW reshape is free; the hw slice is
    # a no-op whenever OH*OW is tile-aligned (no transpose pass anymore).
    return out3d[:, :, :ohw].reshape(n, c_out, oh, ow)


def _reference(x, weight, gamma, beta, *, stride, padding):
    """Plain-JAX f32 reference for correctness check."""
    y = jax.lax.conv_general_dilated(
        x, weight, window_strides=(stride, stride),
        padding=[(padding, padding), (padding, padding)],
        dimension_numbers=("NCHW", "OIHW", "NCHW"))
    mean = jnp.mean(y, axis=(0, 2, 3), keepdims=True)
    var = jnp.mean((y - mean) ** 2, axis=(0, 2, 3), keepdims=True)
    yhat = (y - mean) * jax.lax.rsqrt(var + BN_EPS)
    y = yhat * gamma.reshape(1, -1, 1, 1) + beta.reshape(1, -1, 1, 1)
    return jnp.maximum(y, 0.0)


if __name__ == "__main__":
    # Conv2dBlock(in_channels=4, out_channels=8, kernel_size=3, stride=1,
    #             batchnorm=True, padding=0)
    N, C_IN, H, W = 2, 4, 16, 16
    C_OUT, KSIZE, STRIDE, PAD = 8, 3, 1, 0

    key = jax.random.PRNGKey(0)
    kx, kw_, kg, kb = jax.random.split(key, 4)

    x = jax.random.normal(kx, (N, C_IN, H, W), dtype=jnp.float32)
    fan_in = C_IN * KSIZE * KSIZE
    weight = jax.random.normal(kw_, (C_OUT, C_IN, KSIZE, KSIZE),
                               dtype=jnp.float32) / jnp.sqrt(fan_in)
    gamma = 1.0 + 0.1 * jax.random.normal(kg, (C_OUT,), dtype=jnp.float32)
    beta = 0.1 * jax.random.normal(kb, (C_OUT,), dtype=jnp.float32)

    # block_m=128 keeps >1 hw tile per image at this toy size so the per-core
    # stats-accumulation path is exercised; use 256-512 for real layer sizes.
    out = conv2d_block(x, weight, gamma, beta,
                       kernel_size=KSIZE, stride=STRIDE, padding=PAD,
                       block_m=128)
    out = jax.block_until_ready(out)

    ref = _reference(x, weight, gamma, beta, stride=STRIDE, padding=PAD)
    OH = OW = (H - KSIZE) // STRIDE + 1
    assert out.shape == (N, C_OUT, OH, OW), out.shape
    # bf16 MXU inputs + bf16 conv intermediate -> ~1e-2-level deviation from
    # the pure-f32 reference (intentional).
    max_err = float(jnp.max(jnp.abs(out - ref)))
    assert jnp.allclose(out, ref, atol=1e-1, rtol=1e-1), max_err

    print("KERNEL_OK")
</pallas_src>

<mosaic_0001>
module attributes {stable_mosaic.version = 11 : i64} {
  func.func @_conv_stats_kernel(%arg0: i32, %arg1: i32, %arg2: i32, %arg3: memref<16x36xbf16, #tpu.memory_space<vmem>>, %arg4: memref<1x36x128xbf16, #tpu.memory_space<vmem>>, %arg5: memref<1x16x128xbf16, #tpu.memory_space<vmem>>, %arg6: memref<1x16x1xf32, #tpu.memory_space<vmem>>, %arg7: memref<1x16x1xf32, #tpu.memory_space<vmem>>) attributes {dimension_semantics = [#tpu.dimension_semantics<parallel>, #tpu.dimension_semantics<arbitrary>, #tpu.dimension_semantics<arbitrary>], iteration_bounds = array<i64: 2, 2, 1>, scalar_prefetch = 0 : i64, scratch_operands = 0 : i64, tpu.core_type = #tpu.core_type<tc>, window_params = [{pipeline_mode = #tpu.pipeline_mode<synchronous>, transform_indices = @transform_0, window_bounds = array<i64: 16, 36>}, {transform_indices = @transform_1, window_bounds = array<i64: 1, 36, 128>}, {transform_indices = @transform_2, window_bounds = array<i64: 1, 16, 128>}, {transform_indices = @transform_3, window_bounds = array<i64: 1, 16, 1>}, {transform_indices = @transform_4, window_bounds = array<i64: 1, 16, 1>}]} {
    %c0_i32 = arith.constant 0 : i32
    %0 = arith.cmpi eq, %arg1, %c0_i32 : i32
    %c0_i32_0 = arith.constant 0 : i32
    %1 = arith.cmpi eq, %arg2, %c0_i32_0 : i32
    %2 = arith.andi %0, %1 : i1
    %c0 = arith.constant 0 : index
    %c0_1 = arith.constant 0 : index
    %3 = vector.load %arg3[%c0, %c0_1] : memref<16x36xbf16, #tpu.memory_space<vmem>>, vector<16x36xbf16>
    %c0_2 = arith.constant 0 : index
    %c0_3 = arith.constant 0 : index
    %c0_4 = arith.constant 0 : index
    %4 = vector.load %arg4[%c0_2, %c0_3, %c0_4] : memref<1x36x128xbf16, #tpu.memory_space<vmem>>, vector<1x36x128xbf16>
    %5 = vector.shape_cast %4 : vector<1x36x128xbf16> to vector<36x128xbf16>
    %cst = arith.constant dense<0.000000e+00> : vector<16x128xf32>
    %6 = tpu.matmul %3, %5, %cst {dimension_numbers = #tpu.dot_dimension_numbers<[1], [0], [0], [1], [0, 0, 1, 1], [], []>} : vector<16x36xbf16>, vector<36x128xbf16>, vector<16x128xf32> -> vector<16x128xf32>
    %7 = arith.truncf %6 : vector<16x128xf32> to vector<16x128xbf16>
    %c0_5 = arith.constant 0 : index
    %c0_6 = arith.constant 0 : index
    %c0_7 = arith.constant 0 : index
    %8 = vector.load %arg5[%c0_5, %c0_6, %c0_7] : memref<1x16x128xbf16, #tpu.memory_space<vmem>>, vector<1x16x128xbf16>
    %9 = vector.shape_cast %8 : vector<1x16x128xbf16> to vector<16x128xbf16>
    %10 = vector.shape_cast %7 : vector<16x128xbf16> to vector<1x16x128xbf16>
    tpu.vector_store %arg5[%c0_5, %c0_6, %c0_7], %10 {strides = array<i32>} : memref<1x16x128xbf16, #tpu.memory_space<vmem>>, vector<1x16x128xbf16>,
    %11 = arith.extui %2 : i1 to i32
    %c0_i32_8 = arith.constant 0 : i32
    %12 = arith.cmpi ne, %11, %c0_i32_8 : i32
    scf.if %12 {
      %cst_25 = arith.constant 0.000000e+00 : f32
      %34 = vector.broadcast %cst_25 : f32 to vector<1x16x1xf32>
      %c0_26 = arith.constant 0 : index
      %c0_27 = arith.constant 0 : index
      %c0_28 = arith.constant 0 : index
      %35 = vector.load %arg6[%c0_26, %c0_27, %c0_28] : memref<1x16x1xf32, #tpu.memory_space<vmem>>, vector<1x16x1xf32>
      tpu.vector_store %arg6[%c0_26, %c0_27, %c0_28], %34 {strides = array<i32>} : memref<1x16x1xf32, #tpu.memory_space<vmem>>, vector<1x16x1xf32>,
      %cst_29 = arith.constant 0.000000e+00 : f32
      %36 = vector.broadcast %cst_29 : f32 to vector<1x16x1xf32>
      %c0_30 = arith.constant 0 : index
      %c0_31 = arith.constant 0 : index
      %c0_32 = arith.constant 0 : index
      %37 = vector.load %arg7[%c0_30, %c0_31, %c0_32] : memref<1x16x1xf32, #tpu.memory_space<vmem>>, vector<1x16x1xf32>
      tpu.vector_store %arg7[%c0_30, %c0_31, %c0_32], %36 {strides = array<i32>} : memref<1x16x1xf32, #tpu.memory_space<vmem>>, vector<1x16x1xf32>,
    } else {
    }
    %cst_9 = arith.constant 0.000000e+00 : f32
    %13 = vector.broadcast %cst_9 : f32 to vector<16x1xf32>
    %cst_10 = arith.constant 0.000000e+00 : f32
    %14 = vector.broadcast %cst_10 : f32 to vector<16x1xf32>
    %cst_11 = arith.constant dense<0.000000e+00> : vector<16xf32>
    %15 = vector.multi_reduction <add>, %6, %cst_11 [1] : vector<16x128xf32> to vector<16xf32>
    %16 = vector.shape_cast %15 : vector<16xf32> to vector<16x1xf32>
    %17 = arith.addf %13, %16 : vector<16x1xf32>
    %18 = arith.mulf %6, %6 : vector<16x128xf32>
    %cst_12 = arith.constant dense<0.000000e+00> : vector<16xf32>
    %19 = vector.multi_reduction <add>, %18, %cst_12 [1] : vector<16x128xf32> to vector<16xf32>
    %20 = vector.shape_cast %19 : vector<16xf32> to vector<16x1xf32>
    %21 = arith.addf %14, %20 : vector<16x1xf32>
    %c0_13 = arith.constant 0 : index
    %c0_14 = arith.constant 0 : index
    %c0_15 = arith.constant 0 : index
    %22 = vector.load %arg6[%c0_13, %c0_14, %c0_15] : memref<1x16x1xf32, #tpu.memory_space<vmem>>, vector<1x16x1xf32>
    %23 = vector.shape_cast %22 : vector<1x16x1xf32> to vector<16x1xf32>
    %24 = arith.addf %23, %17 : vector<16x1xf32>
    %c0_16 = arith.constant 0 : index
    %c0_17 = arith.constant 0 : index
    %c0_18 = arith.constant 0 : index
    %25 = vector.load %arg6[%c0_16, %c0_17, %c0_18] : memref<1x16x1xf32, #tpu.memory_space<vmem>>, vector<1x16x1xf32>
    %26 = vector.shape_cast %25 : vector<1x16x1xf32> to vector<16x1xf32>
    %27 = vector.shape_cast %24 : vector<16x1xf32> to vector<1x16x1xf32>
    tpu.vector_store %arg6[%c0_16, %c0_17, %c0_18], %27 {strides = array<i32>} : memref<1x16x1xf32, #tpu.memory_space<vmem>>, vector<1x16x1xf32>,
    %c0_19 = arith.constant 0 : index
    %c0_20 = arith.constant 0 : index
    %c0_21 = arith.constant 0 : index
    %28 = vector.load %arg7[%c0_19, %c0_20, %c0_21] : memref<1x16x1xf32, #tpu.memory_space<vmem>>, vector<1x16x1xf32>
    %29 = vector.shape_cast %28 : vector<1x16x1xf32> to vector<16x1xf32>
    %30 = arith.addf %29, %21 : vector<16x1xf32>
    %c0_22 = arith.constant 0 : index
    %c0_23 = arith.constant 0 : index
    %c0_24 = arith.constant 0 : index
    %31 = vector.load %arg7[%c0_22, %c0_23, %c0_24] : memref<1x16x1xf32, #tpu.memory_space<vmem>>, vector<1x16x1xf32>
    %32 = vector.shape_cast %31 : vector<1x16x1xf32> to vector<16x1xf32>
    %33 = vector.shape_cast %30 : vector<16x1xf32> to vector<1x16x1xf32>
    tpu.vector_store %arg7[%c0_22, %c0_23, %c0_24], %33 {strides = array<i32>} : memref<1x16x1xf32, #tpu.memory_space<vmem>>, vector<1x16x1xf32>,
    return
  }
  func.func @transform_0(%arg0: i32, %arg1: i32, %arg2: i32) -> (i32, i32) {
    %c0_i32 = arith.constant 0 : i32
    %c0_i32_0 = arith.constant 0 : i32
    %c0_i32_1 = arith.constant 0 : i32
    return %c0_i32, %c0_i32_0 : i32, i32
  }
  func.func @transform_1(%arg0: i32, %arg1: i32, %arg2: i32) -> (i32, i32, i32) {
    %c1_i32 = arith.constant 1 : i32
    %0 = arith.muli %arg0, %c1_i32 : i32
    %1 = arith.addi %0, %arg2 : i32
    %c0_i32 = arith.constant 0 : i32
    %c0_i32_0 = arith.constant 0 : i32
    return %arg1, %c0_i32, %1 : i32, i32, i32
  }
  func.func @transform_2(%arg0: i32, %arg1: i32, %arg2: i32) -> (i32, i32, i32) {
    %c1_i32 = arith.constant 1 : i32
    %0 = arith.muli %arg0, %c1_i32 : i32
    %1 = arith.addi %0, %arg2 : i32
    %c0_i32 = arith.constant 0 : i32
    %c0_i32_0 = arith.constant 0 : i32
    return %arg1, %c0_i32, %1 : i32, i32, i32
  }
  func.func @transform_3(%arg0: i32, %arg1: i32, %arg2: i32) -> (i32, i32, i32) {
    %c0_i32 = arith.constant 0 : i32
    %c0_i32_0 = arith.constant 0 : i32
    %c0_i32_1 = arith.constant 0 : i32
    return %arg0, %c0_i32, %c0_i32_0 : i32, i32, i32
  }
  func.func @transform_4(%arg0: i32, %arg1: i32, %arg2: i32) -> (i32, i32, i32) {
    %c0_i32 = arith.constant 0 : i32
    %c0_i32_0 = arith.constant 0 : i32
    %c0_i32_1 = arith.constant 0 : i32
    return %arg0, %c0_i32, %c0_i32_0 : i32, i32, i32
  }
}

module attributes {stable_mosaic.version = 11 : i64} {
  func.func @_bn_relu_kernel(%arg0: i32, %arg1: i32, %arg2: memref<16x1xf32, #tpu.memory_space<vmem>>, %arg3: memref<16x1xf32, #tpu.memory_space<vmem>>, %arg4: memref<1x16x256xbf16, #tpu.memory_space<vmem>>, %arg5: memref<1x8x256xf32, #tpu.memory_space<vmem>>) attributes {dimension_semantics = [#tpu.dimension_semantics<parallel>, #tpu.dimension_semantics<parallel>], iteration_bounds = array<i64: 2, 1>, scalar_prefetch = 0 : i64, scratch_operands = 0 : i64, tpu.core_type = #tpu.core_type<tc>, window_params = [{pipeline_mode = #tpu.pipeline_mode<synchronous>, transform_indices = @transform_0, window_bounds = array<i64: 16, 1>}, {pipeline_mode = #tpu.pipeline_mode<synchronous>, transform_indices = @transform_1, window_bounds = array<i64: 16, 1>}, {transform_indices = @transform_2, window_bounds = array<i64: 1, 16, 256>}, {transform_indices = @transform_3, window_bounds = array<i64: 1, 8, 256>}]} {
    %c0 = arith.constant 0 : index
    %c0_0 = arith.constant 0 : index
    %c0_1 = arith.constant 0 : index
    %0 = vector.load %arg4[%c0, %c0_0, %c0_1] : memref<1x16x256xbf16, #tpu.memory_space<vmem>>, vector<1x16x256xbf16>
    %1 = vector.shape_cast %0 : vector<1x16x256xbf16> to vector<16x256xbf16>
    %2 = arith.extf %1 : vector<16x256xbf16> to vector<16x256xf32>
    %c0_2 = arith.constant 0 : index
    %c0_3 = arith.constant 0 : index
    %3 = vector.load %arg2[%c0_2, %c0_3] : memref<16x1xf32, #tpu.memory_space<vmem>>, vector<16x1xf32>
    %4 = vector.broadcast %3 : vector<16x1xf32> to vector<16x256xf32>
    %5 = arith.mulf %2, %4 : vector<16x256xf32>
    %c0_4 = arith.constant 0 : index
    %c0_5 = arith.constant 0 : index
    %6 = vector.load %arg3[%c0_4, %c0_5] : memref<16x1xf32, #tpu.memory_space<vmem>>, vector<16x1xf32>
    %7 = vector.broadcast %6 : vector<16x1xf32> to vector<16x256xf32>
    %8 = arith.addf %5, %7 : vector<16x256xf32>
    %cst = arith.constant 0.000000e+00 : f32
    %9 = vector.broadcast %cst : f32 to vector<16x256xf32>
    %10 = arith.maximumf %8, %9 : vector<16x256xf32>
    %11 = vector.extract_strided_slice %10 {offsets = [0, 0], sizes = [8, 256], strides = [1, 1]} : vector<16x256xf32> to vector<8x256xf32>
    %c0_6 = arith.constant 0 : index
    %c0_7 = arith.constant 0 : index
    %c0_8 = arith.constant 0 : index
    %12 = vector.load %arg5[%c0_6, %c0_7, %c0_8] : memref<1x8x256xf32, #tpu.memory_space<vmem>>, vector<1x8x256xf32>
    %13 = vector.shape_cast %12 : vector<1x8x256xf32> to vector<8x256xf32>
    %14 = vector.shape_cast %11 : vector<8x256xf32> to vector<1x8x256xf32>
    tpu.vector_store %arg5[%c0_6, %c0_7, %c0_8], %14 {strides = array<i32>} : memref<1x8x256xf32, #tpu.memory_space<vmem>>, vector<1x8x256xf32>,
    return
  }
  func.func @transform_0(%arg0: i32, %arg1: i32) -> (i32, i32) {
    %c0_i32 = arith.constant 0 : i32
    %c0_i32_0 = arith.constant 0 : i32
    %c0_i32_1 = arith.constant 0 : i32
    return %c0_i32, %c0_i32_0 : i32, i32
  }
  func.func @transform_1(%arg0: i32, %arg1: i32) -> (i32, i32) {
    %c0_i32 = arith.constant 0 : i32
    %c0_i32_0 = arith.constant 0 : i32
    %c0_i32_1 = arith.constant 0 : i32
    return %c0_i32, %c0_i32_0 : i32, i32
  }
  func.func @transform_2(%arg0: i32, %arg1: i32) -> (i32, i32, i32) {
    %c0_i32 = arith.constant 0 : i32
    %c0_i32_0 = arith.constant 0 : i32
    return %arg0, %c0_i32, %arg1 : i32, i32, i32
  }
  func.func @transform_3(%arg0: i32, %arg1: i32) -> (i32, i32, i32) {
    %c0_i32 = arith.constant 0 : i32
    %c0_i32_0 = arith.constant 0 : i32
    return %arg0, %c0_i32, %arg1 : i32, i32, i32
  }
}

</mosaic_0001>

<bundles_post_ra>
// kernel: conv2d_block.3
= control target key start
LH: loop header
LB: loop body
LE: loop exit
PB: predicated region body
PF: predicated region fallthrough
CT: control target
= control target key end

     0   :  { %8 = vsyncpa [#allocation3], 0  ;;  %s957_s0 = inlined_call_operand.hbm [shape: f32[16,1], index: 0, kind: input, shape index: {}]   ;;  %s958_s1 = inlined_call_operand.hbm [shape: f32[16,1], index: 1, kind: input, shape index: {}]   ;;  %s959_s2 = inlined_call_operand.hbm [shape: bf16[2,16,256], index: 2, kind: input, shape index: {}]   ;;  %s960_s3 = inlined_call_operand.hbm [shape: f32[2,8,256], index: 3, kind: output, shape index: {}]  }
   0x1   :  { %9 = vsyncpa [#allocation6], 0 }
   0x2   :  { %10 = vsyncpa [#allocation4], 0 }
   0x3   :  { %12 = vsyncpa [#allocation4 + $0x1], 0  ;;  %s692_s12 = smov 0   ;;  %s694_s13 = smov 0  }
   0x4   :  { %s696_s14 = smov 0   ;;  %s698_s15 = smov 0  }
   0x5   :  { %s700_s16 = smov 0   ;;  %s702_s17 = smov 0  }
   0x6 LB: > { %s723_s18 = sadd.s32 4294967295, %s663_s17   ;;  %s380_s19 = sadd.s32 4294967294, %s663_s17   ;;  %s663_s17 = sphi %s702_s17, %s18_s17   ;;  %s659_s16 = sphi %s700_s16, %s985_s16   ;;  %s655_s15 = sphi %s698_s15, %s984_s15   ;;  %s651_s14 = sphi %s696_s14, %s983_s14   ;;  %s647_s13 = sphi %s694_s13, %s982_s13   ;;  %s643_s12 = sphi %s692_s12, %s981_s12  }
   0x7   : > { %p88_p0 = scmp.ne.s32.totalorder %s651_s14, %s647_s13  ;;  %p89_p1 = scmp.eq.s32.totalorder %s663_s17, 0 }
   0x8   : > { %p94_p2 = scmp.ne.s32.totalorder %s647_s13, %s643_s12  ;;  %p961_p3 = scmp.eq.s32.totalorder %s723_s18, 0 }
   0x9   : > { %p732_p4 = por %p89_p1, %p88_p0  ;;  %p120_p5 = scmp.eq.s32.totalorder %s723_s18, 1 }
   0xa   : > { %p739_p6 = por %p961_p3, %p94_p2  ;;  %p126_p7 = scmp.eq.s32.totalorder %s380_s19, 1 }
   0xb   : > { %p743_p8 = por %p120_p5, %p88_p0  ;;  %p381_p9 = scmp.ge.s32.totalorder %s663_s17, 1 }
   0xc   : > { %s966_s21 = scalar_select %p739_p6, 1, 0 }
   0xd   : > { %s967_s22 = scalar_select %p743_p8, 1, 0 }
   0xe   : > { %p748_p10 = por %p126_p7, %p94_p2  ;;  %p133_p11 = scmp.lt.s32.totalorder %s663_s17, 3 }
   0xf   : > { %s665_s25 = smov [#allocation2]   ;;  %p429_p1 = scmp.lt.s32.totalorder %s663_s17, 2 }
  0x10   : > { %s968_s23 = scalar_select %p748_p10, 1, 0 }
  0x11   : > { %p753_p12 = pnand %p381_p9, %p133_p11  ;;  %s145_s26 = sshll.u32 %s665_s25, 4  ;;  %s757_s26 = int_to_ptr.vmem [resolvable:$true] %s145_s26 }
  0x12   : > { %p771_p2 = pnand %p429_p1, %p732_p4  ;;  %s666_s29 = smov [#allocation5]  }
  0x13   : > { %p412_p13 = pneg %p753_p12  ;;  %s158_s30 = sshll.u32 %s666_s29, 4  ;;  %s775_s30 = int_to_ptr.vmem [resolvable:$true] %s158_s30 }
  0x14   : > { %s487_s6 = scalar_lea.hbm %s957_s0, 256 }
  0x15   : > { %p765_p5 = pnand %p412_p13, %p961_p3  ;;  %p488_p7 = scmp.ne.s32.totalorder %s957_s0, %s487_s6 }
  0x16   : > { %p494_p13 = scmp.lt.u32.totalorder %s487_s6, %s957_s0 }
  0x17   : > { %p489_p9 = pneg %p765_p5 }
  0x19   : > { %p490_p4 = pnand %p489_p9, %p488_p7 }
  0x1b   : > { %p491_p11 = pneg %p490_p4 }
  0x1d   : > { %p496_p1 = pnand %p494_p13, %p491_p11 }
  0x1f   : > { %499 = shalt.err (!%p496_p1)
}
  0x20   : > { %s500_s11 = scalar_lea.vmem %s757_s26, 256  ;;  %p508_p8 = scmp.lt.s32.totalorder %s757_s26, %s757_s26 }
  0x21   : > { %p501_p0 = scmp.ne.s32.totalorder %s757_s26, %s500_s11  ;;  %p509_p7 = scmp.lt.s32.totalorder %s500_s11, %s500_s11 }
  0x23   : > { %p503_p3 = pnand %p501_p0, %p489_p9  ;;  %p510_p4 = por %p509_p7, %p508_p8 }
  0x25   : > { %p504_p10 = pneg %p503_p3 }
  0x27   : > { %p511_p6 = pnand %p510_p4, %p504_p10 }
  0x29   : > { %514 = shalt.err (!%p511_p6)
}
  0x2a   : > { %s964_s19 = smov 128   ;;  %s668_s20 = smov 8  }
  0x2b   : > { %415 = dma.hbm_to_vmem [thread:$0]  (!%p765_p5), %s957_s0, 256, %s757_s26, [#allocation3], %s964_s19, %s964_s19, %s668_s20  }
  0x2c   : > { %s515_s6 = scalar_lea.hbm %s958_s1, 256 }
  0x2d   : > { %p516_p3 = scmp.ne.s32.totalorder %s958_s1, %s515_s6  ;;  %p522_p10 = scmp.lt.u32.totalorder %s515_s6, %s958_s1 }
  0x2f   : > { %p518_p6 = pnand %p516_p3, %p489_p9 }
  0x31   : > { %p519_p8 = pneg %p518_p6 }
  0x33   : > { %p524_p0 = pnand %p522_p10, %p519_p8 }
  0x35   : > { %527 = shalt.err (!%p524_p0)
}
  0x36   : > { %s528_s26 = scalar_lea.vmem %s775_s30, 256  ;;  %p536_p7 = scmp.lt.s32.totalorder %s775_s30, %s775_s30 }
  0x37   : > { %p529_p11 = scmp.ne.s32.totalorder %s775_s30, %s528_s26  ;;  %p537_p4 = scmp.lt.s32.totalorder %s528_s26, %s528_s26 }
  0x39   : > { %p531_p13 = pnand %p529_p11, %p489_p9  ;;  %p538_p3 = por %p537_p4, %p536_p7 }
  0x3b   : > { %p532_p1 = pneg %p531_p13 }
  0x3d   : > { %p539_p6 = pnand %p538_p3, %p532_p1 }
  0x3f   : > { %542 = shalt.err (!%p539_p6)
}
  0x40   : > { %418 = dma.hbm_to_vmem [thread:$0]  (!%p765_p5), %s958_s1, 256, %s775_s30, [#allocation6], %s964_s19, %s964_s19, %s668_s20  }
  0x41   : > { %s81_s29 = sadd.s32 1, %s651_s14  ;;  %s30_s4 = sadd.s32 1, %s659_s16 }
  0x42   : > { %s172_s5 = sand.u32 1, %s663_s17   ;;  %p32_p9 = scmp.ge.s32.totalorder %s30_s4, 2 }
  0x43   : > { %s174_s27 = sand.u32 1, %s651_s14   ;;  %s398_s6 = sshll.u32 %s659_s16, 8 }
  0x44   : > { %s987_s4 = smov (%p32_p9, %s30_s4), 0  ;;  %s385_s7 = sshll.u32 %s174_s27, 4 }
  0x45   : > { %s845_s10 = scalar_lea.hbm %s959_s2, %s398_s6  ;;  %s76_s30 = ssub.s32 %s659_s16, %s987_s4 }
  0x46   : > { %p79_p5 = scmp.eq.s32.totalorder %s76_s30, 0  ;;  %s176_s26 = scalar_lea.vmem [#allocation7], %s385_s7 }
  0x47   : > { %s185_s11 = sshll.u32 %s176_s26, 4  ;;  %s854_s19 = scalar_lea.sflag [#allocation3], %s172_s5  ;;  %s849_s11 = int_to_ptr.vmem [resolvable:$true] %s185_s11 }
  0x48   : > { %s852_s25 = scalar_select %p79_p5, %s651_s14, %s81_s29  }
  0x49   : > { %s543_s27 = scalar_lea.hbm %s845_s10, 256  ;;  %p545_p10 = pneg %p771_p2 }
  0x4a   : > { %p544_p8 = scmp.ne.s32.totalorder %s845_s10, %s543_s27  ;;  %s548_s9 = scalar_lea.hbm %s959_s2, 512 }
  0x4b   : > { %p549_p13 = scmp.lt.u32.totalorder %s845_s10, %s959_s2  ;;  %p550_p1 = scmp.lt.u32.totalorder %s548_s9, %s543_s27 }
  0x4c   : > { %p546_p0 = pnand %p545_p10, %p544_p8  ;;  %p552_p4 = scmp.lt.u32.totalorder %s543_s27, %s845_s10 }
  0x4d   : > { %p551_p7 = por %p550_p1, %p549_p13 }
  0x4e   : > { %p547_p11 = pneg %p546_p0 }
  0x4f   : > { %p553_p3 = por %p552_p4, %p551_p7 }
  0x51   : > { %p554_p6 = pnand %p553_p3, %p547_p11 }
  0x53   : > { %557 = shalt.err (!%p554_p6)
}
  0x54   : > { %s558_s29 = scalar_lea.vmem %s849_s11, 256  ;;  %s669_s5 = smov [#allocation7]  }
  0x55   : > { %p559_p9 = scmp.ne.s32.totalorder %s849_s11, %s558_s29  ;;  %s563_s26 = sshll.u32 %s669_s5, 4  ;;  %s564_s26 = int_to_ptr.vmem [resolvable:$false] %s563_s26 }
  0x56   : > { %s565_s6 = scalar_lea.vmem %s564_s26, 512  ;;  %p566_p0 = scmp.lt.s32.totalorder %s849_s11, %s564_s26 }
  0x57   : > { %p561_p5 = pnand %p559_p9, %p545_p10  ;;  %p567_p13 = scmp.lt.s32.totalorder %s565_s6, %s558_s29 }
  0x59   : > { %p562_p8 = pneg %p561_p5  ;;  %p568_p1 = por %p567_p13, %p566_p0 }
  0x5b   : > { %p569_p7 = pnand %p568_p1, %p562_p8 }
  0x5d   : > { %572 = shalt.err (!%p569_p7)
}
  0x5e   : > { %s972_s27 = smov 128   ;;  %197 = sbr.rel (%p753_p12) target bundleno = 262 (0x106), region = 32 }
  0x5f   : > { %422 = dma.hbm_to_vmem [thread:$0]  (!%p771_p2), %s845_s10, 256, %s849_s11, %s854_s19, %s972_s27, %s972_s27, %s668_s20  }
  0x60   : > { %p973_p10 = scmp.eq.s32.totalorder (!%p753_p12), %s723_s18, 0 }
  0x65   : > { %626 = dma.done.wait (%p973_p10), [#allocation3], 256   ;;  %p974_p11 = pmov %p973_p10 }
  0x66   : > { %p975_p4 = pmov %p973_p10 }
  0x67   : > { %628 = vsyncadd (%p974_p11), [#allocation3], 4294967040 }
  0x68   : > { %630 = dma.done.wait (%p975_p4), [#allocation6], 256   ;;  %p976_p3 = pmov %p975_p4 }
  0x69   : > { %s207_s28 = sand.u32 1, %s723_s18   ;;  %s209_s19 = sand.u32 1, %s647_s13  }
  0x6a   : > { %632 = vsyncadd (%p976_p3), [#allocation6], 4294967040  ;;  %s391_s24 = sshll.u32 %s209_s19, 4  ;;  %s208_s20 = scalar_lea.sflag [#allocation3], %s207_s28 }
  0x6b   : > { %s211_s10 = scalar_lea.vmem [#allocation7], %s391_s24  ;;  %p977_p12 = scmp.ne.s32.totalorder %s966_s21, 0 }
  0x6d   : > { %634 = dma.done.wait (%p977_p12), %s208_s20, 256  }
  0x6e   : > { %636 = vsyncadd (%p977_p12), %s208_s20, 4294967040  ;;  %v670_v0 = vmov 0   ;;  %v239_v1 = vld [vmem:[#allocation2] sm:$0xff]  ;;  %v247_v2 = vld [vmem:[#allocation5] sm:$0xff]  ;;  %s399_s18 = sshll.u32 %s655_s15, 8  ;;  %s233_s11 = scalar_lea.vmem [#allocation8], %s391_s24 }
  0x6f   : > { %486 = vset.pattern.permute.xlu0 %v670_v0  ;;  %v236_v3 = vld [vmem:[%s211_s10] sm:$0xff]  ;;  %s276_s21 = sshll.u32 %s233_s11, 4  ;;  %s907_s7 = scalar_lea.hbm %s960_s3, %s399_s18  ;;  %s909_s21 = int_to_ptr.vmem [resolvable:$true] %s276_s21 }
  0x70   : > { %242 = vperm.xlu0 %486, %v239_v1   ;;  %v237_v4 = vunpack.c.l.bf16 %v236_v3  ;;  %v238_v5 = vunpack.c.h.bf16 %v236_v3  ;;  %s260_s15 = scalar_lea.sflag [#allocation4], %s209_s19  ;;  %s573_s30 = scalar_lea.vmem %s909_s21, 256 }
  0x71   : > { %p574_p2 = scmp.ne.s32.totalorder %s909_s21, %s573_s30  ;;  %p978_p6 = scmp.ne.s32.totalorder %s967_s22, 0 }
  0x72   : > { %s671_s29 = smov [#allocation8]  }
  0x73   : > { %p575_p9 = pnand %p574_p2, %p978_p6  ;;  %s577_s5 = sshll.u32 %s671_s29, 4  ;;  %s578_s5 = int_to_ptr.vmem [resolvable:$false] %s577_s5 }
  0x74   : > { %250 = vperm.xlu0 %486, %v247_v2   ;;  %s579_s26 = scalar_lea.vmem %s578_s5, 512  ;;  %p580_p8 = scmp.lt.s32.totalorder %s909_s21, %s578_s5 }
  0x75   : > { %p576_p5 = pneg %p575_p9  ;;  %p581_p0 = scmp.lt.s32.totalorder %s579_s26, %s573_s30 }
  0x77   : > { %p582_p13 = por %p581_p0, %p580_p8 }
  0x79   : > { %p583_p1 = pnand %p582_p13, %p576_p5 }
  0xef   : > { %v243_v6 = vpop.permute.xlu0 %242 }
  0xf0   : > { %v245_v7 = vmul.f32 %v243_v6, %v237_v4  ;;  %v246_v8 = vmul.f32 %v243_v6, %v238_v5 }
  0xf3   : > { %v251_v9 = vpop.permute.xlu0 %250 }
  0xf4   : > { %v253_v10 = vadd.f32 %v251_v9, %v245_v7  ;;  %v254_v11 = vadd.f32 %v251_v9, %v246_v8 }
  0xf6   : > { %v255_v12 = vmax.f32 %v253_v10, 0.0  ;;  %v256_v13 = vmax.f32 %v254_v11, 0.0 }
  0xf8   : > { %257 = vst [vmem:[%s233_s11] sm:$0xff] %v255_v12  ;;  %258 = vst [vmem:[%s233_s11 + $0x8] sm:$0xff] %v256_v13 }
  0xf9   : > { %586 = shalt.err (!%p583_p1)
}
  0xfa   : > { %s587_s6 = scalar_lea.hbm %s907_s7, 256  ;;  %s591_s19 = scalar_lea.hbm %s960_s3, 512 }
  0xfb   : > { %p588_p7 = scmp.ne.s32.totalorder %s907_s7, %s587_s6  ;;  %p592_p4 = scmp.lt.u32.totalorder %s907_s7, %s960_s3 }
  0xfc   : > { %p593_p3 = scmp.lt.u32.totalorder %s591_s19, %s587_s6  ;;  %p595_p2 = scmp.lt.u32.totalorder %s587_s6, %s907_s7 }
  0xfd   : > { %p589_p10 = pnand %p588_p7, %p978_p6 }
  0xfe   : > { %p594_p12 = por %p593_p3, %p592_p4 }
  0xff   : > { %p590_p11 = pneg %p589_p10 }
 0x100   : > { %p596_p9 = por %p595_p2, %p594_p12 }
 0x102   : > { %p597_p5 = pnand %p596_p9, %p590_p11 }
 0x104   : > { %600 = shalt.err (!%p597_p5)
}
 0x105   : > { %410 = dma.vmem_to_hbm [thread:$0]  (%p978_p6), %s909_s21, 256, %s907_s7, %s260_s15  }
 0x106 PF: > { %s288_s10 = sand.u32 1, %s643_s12   ;;  %p979_p8 = scmp.ne.s32.totalorder %s968_s23, 0 }
 0x107   : > { %p980_p0 = scmp.ge.s32.totalorder %s663_s17, 2  ;;  %s289_s18 = scalar_lea.sflag [#allocation4], %s288_s10 }
 0x109   : > { %p424_p13 = pnand %p980_p0, %p979_p8 }
 0x10b   : > { %638 = dma.done.wait (!%p424_p13), %s289_s18, 256  }
 0x10c   : > { %640 = vsyncadd (!%p424_p13), %s289_s18, 4294967040  ;;  %s18_s17 = sadd.s32 1, %s663_s17   ;;  %s981_s12 = smov %s647_s13 }
 0x10d   : > { %p15_p1 = scmp.ge.s32.totalorder %s18_s17, 4   ;;  %s982_s13 = smov %s651_s14 }
 0x10e   : > { %s983_s14 = smov %s852_s25  ;;  %s984_s15 = smov %s659_s16 }
 0x10f   : > { %s985_s16 = smov %s987_s4  ;;  %17 = sbr.rel (!%p15_p1) target bundleno = 6 (0x6), region = 84 }
 0x116   :  { %294 = vsyncpa [#allocation3], 1 }
 0x117   :  { %296 = vsyncpa [#allocation3 + $0x1], 1 }
 0x118   :  { %297 = vsyncpa [#allocation6], 1 }
 0x119   :  { %298 = vsyncpa [#allocation4], 1 }
 0x11a   :  { %300 = vsyncpa [#allocation4 + $0x1], 1 }

// kernel: conv2d_block.2
= control target key start
LH: loop header
LB: loop body
LE: loop exit
PB: predicated region body
PF: predicated region fallthrough
CT: control target
= control target key end

     0   :  { %s1497_s0 = inlined_call_operand.hbm [shape: bf16[16,36], index: 0, kind: input, shape index: {}]   ;;  %s1498_s1 = inlined_call_operand.hbm [shape: bf16[2,36,256], index: 1, kind: input, shape index: {}]   ;;  %s1499_s2 = inlined_call_operand.hbm [shape: bf16[2,16,256], index: 2, kind: output, shape index: {0}]   ;;  %s1500_s3 = inlined_call_operand.hbm [shape: f32[2,16,1], index: 3, kind: output, shape index: {1}]   ;;  %s1501_s4 = inlined_call_operand.hbm [shape: f32[2,16,1], index: 4, kind: output, shape index: {2}]  }
   0x1   :  { %1519 = sst [smem:[#allocation22_spill]] %s1497_s0 }
   0x2   :  { %1520 = sst [smem:[#allocation23_spill]] %s1501_s4 }
   0x3   :  { %10 = vsyncpa [#allocation3], 0 }
   0x4   :  { %11 = vsyncpa [#allocation6], 0 }
   0x5   :  { %13 = vsyncpa [#allocation6 + $0x1], 0 }
   0x6   :  { %14 = vsyncpa [#allocation4], 0 }
   0x7   :  { %16 = vsyncpa [#allocation4 + $0x1], 0 }
   0x8   :  { %17 = vsyncpa [#allocation9], 0 }
   0x9   :  { %19 = vsyncpa [#allocation9 + $0x1], 0  ;;  %s1109_s15 = smov 0   ;;  %s1111_s16 = smov 0  }
   0xa   :  { %s1113_s17 = smov 0   ;;  %s1115_s18 = smov 0  }
   0xb   :  { %s1117_s19 = smov 0   ;;  %s1119_s20 = smov 0  }
   0xc   :  { %s1121_s21 = smov 0   ;;  %s1123_s22 = smov 0  }
   0xd   :  { %s1125_s23 = smov 0   ;;  %s1127_s24 = smov 0  }
   0xe   :  { %s1129_s25 = smov 0  }
   0xf LB: > { %1521 = sst [smem:[#allocation15_spill]] %s1039_s18  ;;  %s1165_s26 = sadd.s32 4294967295, %s1067_s25   ;;  %s1067_s25 = sphi %s1129_s25, %s25_s25   ;;  %s1063_s24 = sphi %s1127_s24, %s1571_s24   ;;  %s1059_s23 = sphi %s1125_s23, %s1570_s23   ;;  %s1055_s22 = sphi %s1123_s22, %s1569_s22   ;;  %s1051_s21 = sphi %s1121_s21, %s1560_s21   ;;  %s1047_s20 = sphi %s1119_s20, %s1568_s20   ;;  %s1043_s19 = sphi %s1117_s19, %s1567_s19   ;;  %s1039_s18 = sphi %s1115_s18, %s1566_s18   ;;  %s1035_s17 = sphi %s1113_s17, %s1565_s17   ;;  %s1031_s16 = sphi %s1111_s16, %s1564_s16   ;;  %s1027_s15 = sphi %s1109_s15, %s1563_s15  }
  0x10   : > { %1522 = sst [smem:[#allocation16_spill]] %s1059_s23  ;;  %s1504_s27 = sadd.s32 4294967294, %s1067_s25  }
  0x11   : > { %1523 = sst [smem:[#allocation17_spill]] %s1067_s25  ;;  %p83_p0 = scmp.ne.s32.totalorder %s1047_s20, %s1043_s19 }
  0x12   : > { %p84_p1 = scmp.eq.s32.totalorder %s1067_s25, 0  ;;  %p89_p2 = scmp.ne.s32.totalorder %s1043_s19, %s1039_s18 }
  0x13   : > { %p1502_p3 = scmp.eq.s32.totalorder %s1165_s26, 0  ;;  %p117_p4 = scmp.eq.s32.totalorder %s1165_s26, 3 }
  0x14   : > { %p1176_p5 = por %p84_p1, %p83_p0  ;;  %p123_p6 = scmp.eq.s32.totalorder %s1504_s27, 3 }
  0x15   : > { %p1184_p7 = por %p1502_p3, %p89_p2  ;;  %p1188_p8 = por %p117_p4, %p83_p0 }
  0x16   : > { %s1524_s29 = scalar_select %p1176_p5, 1, 0 }
  0x17   : > { %s1525_s30 = scalar_select %p1184_p7, 1, 0 }
  0x18   : > { %s1526_s5 = scalar_select %p1188_p8, 1, 0 }
  0x19   : > { %p1192_p9 = por %p123_p6, %p89_p2  ;;  %p142_p10 = scmp.ne.s32.totalorder %s1035_s17, %s1031_s16 }
  0x1a   : > { %p148_p11 = scmp.ne.s32.totalorder %s1031_s16, %s1027_s15  ;;  %p631_p12 = scmp.ge.s32.totalorder %s1067_s25, 1 }
  0x1b   : > { %s1527_s6 = scalar_select %p1192_p9, 1, 0 }
  0x1c   : > { %p182_p13 = scmp.lt.s32.totalorder %s1067_s25, 5  ;;  %p1203_p1 = por %p142_p10, %p117_p4 }
  0x1d   : > { %1528 = sst [smem:[#allocation18_spill]] %s1527_s6  ;;  %p1207_p3 = por %p148_p11, %p123_p6 }
  0x1e   : > { %s1529_s8 = scalar_select %p1203_p1, 1, 0 }
  0x1f   : > { %s1530_s9 = scalar_select %p1207_p3, 1, 0 }
  0x20   : > { %p1211_p0 = pnand %p631_p12, %p182_p13  ;;  %s1069_s11 = smov [#allocation2]  }
  0x21   : > { %1531 = sst [smem:[#allocation19_spill]] %s1530_s9  ;;  %s194_s12 = sshll.u32 %s1069_s11, 4  ;;  %s195_s12 = int_to_ptr.vmem [resolvable:$true] %s194_s12 }
  0x22   : > { %s1532_s10 = scalar_select %p1211_p0, 1, 0 }
  0x23   : > { %p698_p2 = pneg %p1211_p0  ;;  %p1533_p9 = scmp.eq.s32.totalorder %s1165_s26, 0 }
  0x24   : > { %s1535_s0 = sld [smem:[#allocation22_spill]] }
  0x25   : > { %p1219_p8 = pnand %p698_p2, %p1533_p9 }
  0x27   : > { %p825_p10 = pneg %p1219_p8 }
  0x2a   : > { %s823_s27 = scalar_lea.hbm %s1535_s0, 128 }
  0x2b   : > { %p824_p6 = scmp.ne.s32.totalorder %s1535_s0, %s823_s27  ;;  %p830_p9 = scmp.lt.u32.totalorder %s823_s27, %s1535_s0 }
  0x2d   : > { %p826_p11 = pnand %p825_p10, %p824_p6 }
  0x2f   : > { %p827_p12 = pneg %p826_p11 }
  0x31   : > { %p832_p13 = pnand %p830_p9, %p827_p12 }
  0x33   : > { %835 = shalt.err (!%p832_p13)
}
  0x34   : > { %s836_s6 = scalar_lea.vmem %s195_s12, 128  ;;  %p844_p1 = scmp.lt.s32.totalorder %s195_s12, %s195_s12 }
  0x35   : > { %p837_p2 = scmp.ne.s32.totalorder %s195_s12, %s836_s6  ;;  %p845_p7 = scmp.lt.s32.totalorder %s836_s6, %s836_s6 }
  0x37   : > { %p839_p4 = pnand %p837_p2, %p825_p10  ;;  %p846_p0 = por %p845_p7, %p844_p1 }
  0x39   : > { %p840_p3 = pneg %p839_p4 }
  0x3b   : > { %p847_p5 = pnand %p846_p0, %p840_p3 }
  0x3d   : > { %850 = shalt.err (!%p847_p5)
}
  0x3e   : > { %s1510_s28 = smov 64   ;;  %s1511_s27 = smov 4  }
  0x3f   : > { %701 = dma.hbm_to_vmem [thread:$0]  (!%p1219_p8), %s1535_s0, 128, %s195_s12, [#allocation3], %s1510_s28, %s1510_s28, %s1511_s27  }
  0x40   : > { %p1536_p3 = scmp.ne.s32.totalorder %s1524_s29, 0  ;;  %p1537_p5 = scmp.lt.s32.totalorder %s1067_s25, 4 }
  0x41   : > { %s44_s14 = sadd.s32 1, %s1063_s24  ;;  %s40_s15 = sadd.s32 1, %s1059_s23 }
  0x42   : > { %p1247_p7 = pnand %p1537_p5, %p1536_p3  ;;  %p42_p1 = scmp.ge.s32.totalorder %s40_s15, 2 }
  0x43   : > { %s208_s11 = sand.u32 1, %s1047_s20   ;;  %s684_s12 = smul.u32 10, %s1059_s23 }
  0x44   : > { %s683_s13 = smul.u32 20, %s208_s11  ;;  %s1573_s15 = smov (%p42_p1, %s40_s15), 0 }
  0x45   : > { %1539 = sst [smem:[#allocation20_spill]] %s1573_s15  ;;  %s1575_s14 = smov (!%p42_p1, %s44_s14), %s1063_s24 }
  0x46   : > { %s71_s29 = ssub.s32 %s1059_s23, %s1573_s15  ;;  %p46_p8 = scmp.ge.s32.totalorder %s1575_s14, 2 }
  0x47   : > { %s212_s7 = scalar_lea.vmem [#allocation5], %s683_s13  ;;  %s218_s28 = sadd.s32 %s1063_s24, %s684_s12 }
  0x48   : > { %s221_s6 = sshll.u32 %s212_s7, 4  ;;  %s1577_s14 = smov (%p46_p8, %s1575_s14), 0  ;;  %s1263_s6 = int_to_ptr.vmem [resolvable:$true] %s221_s6 }
  0x49   : > { %1540 = sst [smem:[#allocation21_spill]] %s1577_s14  ;;  %s72_s27 = ssub.s32 %s1063_s24, %s1577_s14 }
  0x4a   : > { %s634_s0 = sshll.u32 %s218_s28, 6  ;;  %s73_s18 = sor.u32 %s72_s27, %s71_s29 }
  0x4b   : > { %p130_p0 = scmp.eq.s32.totalorder %s72_s27, 0  ;;  %p74_p4 = scmp.eq.s32.totalorder %s73_s18, 0 }
  0x4c   : > { %s1270_s15 = scalar_lea.hbm %s1498_s1, %s634_s0  ;;  %s1541_s13 = sadd.s32 1, %s1035_s17 }
  0x4d   : > { %s1275_s7 = scalar_select %p130_p0, %s1035_s17, %s1541_s13  }
  0x4e   : > { %s1542_s12 = sadd.s32 1, %s1047_s20  ;;  %s1282_s14 = scalar_lea.sflag [#allocation6], %s208_s11 }
  0x4f   : > { %s1280_s23 = scalar_select %p74_p4, %s1047_s20, %s1542_s12  }
  0x50   : > { %s851_s28 = scalar_lea.hbm %s1270_s15, 320  ;;  %p853_p10 = pneg %p1247_p7 }
  0x51   : > { %p852_p6 = scmp.ne.s32.totalorder %s1270_s15, %s851_s28  ;;  %s856_s18 = scalar_lea.hbm %s1498_s1, 1280 }
  0x52   : > { %p857_p9 = scmp.lt.u32.totalorder %s1270_s15, %s1498_s1  ;;  %p858_p13 = scmp.lt.u32.totalorder %s856_s18, %s851_s28 }
  0x53   : > { %p854_p11 = pnand %p853_p10, %p852_p6  ;;  %p860_p3 = scmp.lt.u32.totalorder %s851_s28, %s1270_s15 }
  0x54   : > { %p859_p2 = por %p858_p13, %p857_p9 }
  0x55   : > { %p855_p12 = pneg %p854_p11 }
  0x56   : > { %p861_p5 = por %p860_p3, %p859_p2 }
  0x58   : > { %p862_p1 = pnand %p861_p5, %p855_p12 }
  0x5a   : > { %865 = shalt.err (!%p862_p1)
}
  0x5b   : > { %s866_s11 = scalar_lea.vmem %s1263_s6, 320  ;;  %s1072_s29 = smov [#allocation5]  }
  0x5c   : > { %p867_p8 = scmp.ne.s32.totalorder %s1263_s6, %s866_s11  ;;  %s871_s13 = sshll.u32 %s1072_s29, 4  ;;  %s872_s13 = int_to_ptr.vmem [resolvable:$false] %s871_s13 }
  0x5d   : > { %s873_s12 = scalar_lea.vmem %s872_s13, 640  ;;  %p874_p6 = scmp.lt.s32.totalorder %s1263_s6, %s872_s13 }
  0x5e   : > { %p869_p0 = pnand %p867_p8, %p853_p10  ;;  %p875_p11 = scmp.lt.s32.totalorder %s873_s12, %s866_s11 }
  0x60   : > { %p870_p4 = pneg %p869_p0  ;;  %p876_p9 = por %p875_p11, %p874_p6 }
  0x62   : > { %p877_p13 = pnand %p876_p9, %p870_p4 }
  0x64   : > { %880 = shalt.err (!%p877_p13)
}
  0x65   : > { %s1073_s28 = smov 128   ;;  %s1543_s0 = smov 4  }
  0x66   : > { %s1544_s4 = smov 64   ;;  %p1545_p10 = scmp.ne.s32.totalorder %s1532_s10, 0 }
  0x67   : > { %705 = dma.hbm_to_vmem [thread:$0]  (!%p1247_p7), %s1270_s15, 320, %s1263_s6, %s1282_s14, %s1073_s28, %s1544_s4, %s1543_s0  }
  0x68   : > { %233 = sbr.rel (%p1545_p10) target bundleno = 532 (0x214), region = 28  ;;  %p1546_p12 = scmp.eq.s32.totalorder (!%p1545_p10), %s1165_s26, 0 }
  0x6f   : > { %1010 = dma.done.wait (%p1546_p12), [#allocation3], 128   ;;  %p1547_p2 = pmov %p1546_p12 }
  0x70   : > { %s1319_s18 = sand.u32 1, %s1043_s19   ;;  %p1548_p3 = scmp.ne.s32.totalorder %s1525_s30, 0 }
  0x71   : > { %1012 = vsyncadd (%p1547_p2), [#allocation3], 4294967168  ;;  %s685_s9 = smul.u32 20, %s1319_s18  ;;  %s240_s25 = scalar_lea.sflag [#allocation6], %s1319_s18 }
  0x73   : > { %s243_s27 = scalar_lea.vmem [#allocation5], %s685_s9 }
  0x74   : > { %1014 = dma.done.wait (%p1548_p3), %s240_s25, 320  }
  0x75   : > { %1016 = vsyncadd (%p1548_p3), %s240_s25, 4294966976  ;;  %s268_s10 = sand.u32 1, %s1031_s16   ;;  %p281_p7 = scmp.eq.s32.totalorder %s1051_s21, 0  ;;  %v1074_v0 = vmov 0.0   ;;  %vm1075_vm0 = vmmov 0   ;;  %v819_v1 = vld [vmem:[%s243_s27] sm:$0xff]  }
  0x76   : > { %s638_s14 = sshll.u32 %s268_s10, 4  ;;  %673 = vmatprep.subr.bf16.mxu0 %v1074_v0  ;;  %679 = vmatprep.mubr.msk.bf16.mxu0 %vm1075_vm0, %v1074_v0  ;;  %v820_v2 = vld [vmem:[%s243_s27 + $0x8] sm:$0xff]   ;;  %v821_v3 = vld [vmem:[%s243_s27 + $0x10] ss:$0 sps:$4 sm:$0x33]   ;;  %vm316_vm1 = vcmask 1041408  }
  0x77   : > { %674 = vmatpush3.bf16.msra.mxu0 %v819_v1  ;;  %v318_v4 = vsel %vm316_vm1, %v821_v3, 0  ;;  %v822_v5 = vld [vmem:[#allocation2] sm:$0xff]   ;;  %vm312_vm2 = vcmask 293888   ;;  %s637_s30 = sshll.u32 %s1319_s18, 3  ;;  %s1330_s6 = scalar_lea.vmem [#allocation8], %s638_s14  ;;  %vm373_vm3 = vcmask (%p281_p7), 7168  }
  0x78   : > { %675 = vmatprep.subr.bf16.mxu0 %v1074_v0  ;;  %s263_s15 = scalar_lea.vmem [#allocation7], %s637_s30  ;;  %s1332_s11 = scalar_lea.vmem [#allocation10], %s638_s14  ;;  %v1076_v11 = vmov (%p281_p7), 0.0  }
  0x79   : > { %374 = vst.msk [vmem:[%s1330_s6] sm:$0xff] (%p281_p7), %vm373_vm3, %v1076_v11  ;;  %375 = vst.msk [vmem:[%s1330_s6 + $0x8] sm:$0xff] (%p281_p7), %vm373_vm3, %v1076_v11 }
  0x7a   : > { %376 = vst.msk [vmem:[%s1332_s11] sm:$0xff] (%p281_p7), %vm373_vm3, %v1076_v11  ;;  %377 = vst.msk [vmem:[%s1332_s11 + $0x8] sm:$0xff] (%p281_p7), %vm373_vm3, %v1076_v11 }
  0x7b   : > { %676 = vmatpush3.bf16.msra.mxu0 %v820_v2 }
  0x7c   : > { %677 = vmatprep.subr.bf16.mxu0 %v1074_v0 }
  0x7f   : > { %678 = vmatpush3.bf16.msra.mxu0 %v318_v4 }
  0x82   : > { %680 = vmatmul.mubr.msk.bf16.vlgmr.msra.gmra.mrb[0].mxu0 %vm312_vm2, %v822_v5 }
 0x154   : > { %372 = sbr.rel (!%p281_p7) target bundleno = 347 (0x15b), region = 40 }
 0x155   : > { %v354_v6 = vpop.f32.mrb[0].mxu0 }
 0x156   : > { %v681_v7 = vpop.f32.mrb[1].mxu0 }
 0x157   : > { %v357_v8 = vpop.f32.mrb[2].mxu0 }
 0x158   : > { %v667_v9 = vpack.c.bf16 %v357_v8, %v354_v6  ;;  %v682_v10 = vpop.f32.mrb[3].mxu0 }
 0x15a   : > { %668 = vst [vmem:[%s263_s15] sm:$0xff] %v667_v9  }
 0x15b PF: > { %378 = vadd.xlane.f32.xlu0 %v354_v6  ;;  %v384_v12 = vmul.f32 %v354_v6, %v354_v6  ;;  %v385_v13 = vmul.f32 %v357_v8, %v357_v8  ;;  %s651_s29 = sshll.u32 %s1051_s21, 2  ;;  %s431_s12 = sshll.u32 %s263_s15, 4  ;;  %s1342_s12 = int_to_ptr.vmem [resolvable:$true] %s431_s12 }
 0x15c   : > { %s428_s13 = sadd.s32 %s1055_s22, %s651_s29  ;;  %s406_s25 = scalar_lea.sflag [#allocation4], %s1319_s18 }
 0x15d   : > { %386 = vadd.xlane.f32.xlu1 %v384_v12  ;;  %s652_s28 = sshll.u32 %s428_s13, 6  ;;  %s881_s27 = scalar_lea.vmem %s1342_s12, 128 }
 0x15e   : > { %s1347_s9 = scalar_lea.hbm %s1499_s2, %s652_s28  ;;  %p882_p5 = scmp.ne.s32.totalorder %s1342_s12, %s881_s27 }
 0x15f   : > { %380 = vadd.xlane.f32.xlu0 %v357_v8  ;;  %p1549_p1 = scmp.ne.s32.totalorder %s1526_s5, 0  ;;  %s1077_s21 = smov [#allocation7]  }
 0x160   : > { %s885_s10 = sshll.u32 %s1077_s21, 4  ;;  %s886_s10 = int_to_ptr.vmem [resolvable:$false] %s885_s10 }
 0x161   : > { %388 = vadd.xlane.f32.xlu1 %v385_v13  ;;  %p883_p8 = pnand %p882_p5, %p1549_p1  ;;  %s887_s14 = scalar_lea.vmem %s886_s10, 256 }
 0x162   : > { %p888_p4 = scmp.lt.s32.totalorder %s1342_s12, %s886_s10  ;;  %p889_p6 = scmp.lt.s32.totalorder %s887_s14, %s881_s27 }
 0x163   : > { %p884_p0 = pneg %p883_p8 }
 0x164   : > { %p890_p11 = por %p889_p6, %p888_p4 }
 0x166   : > { %p891_p9 = pnand %p890_p11, %p884_p0 }
 0x168   : > { %894 = shalt.err (!%p891_p9)
}
 0x169   : > { %s895_s30 = scalar_lea.hbm %s1347_s9, 128  ;;  %s899_s13 = scalar_lea.hbm %s1499_s2, 512 }
 0x16a   : > { %p896_p13 = scmp.ne.s32.totalorder %s1347_s9, %s895_s30  ;;  %p900_p2 = scmp.lt.u32.totalorder %s1347_s9, %s1499_s2 }
 0x16b   : > { %p901_p3 = scmp.lt.u32.totalorder %s899_s13, %s895_s30  ;;  %p903_p5 = scmp.lt.u32.totalorder %s895_s30, %s1347_s9 }
 0x16c   : > { %p897_p10 = pnand %p896_p13, %p1549_p1 }
 0x16d   : > { %p902_p7 = por %p901_p3, %p900_p2 }
 0x16e   : > { %p898_p12 = pneg %p897_p10 }
 0x16f   : > { %p904_p8 = por %p903_p5, %p902_p7 }
 0x171   : > { %p905_p0 = pnand %p904_p8, %p898_p12 }
 0x173   : > { %908 = shalt.err (!%p905_p0)
}
 0x174   : > { %s1078_s4 = smov 64   ;;  %s1079_s27 = smov 128   ;;  %v392_v14 = vld [vmem:[%s1330_s6] sm:$0xff]  ;;  %vm396_vm4 = vcmask 7168   ;;  %v393_v19 = vld [vmem:[%s1330_s6 + $0x8] sm:$0xff] }
 0x175   : > { %s1080_s21 = smov 4   ;;  %v399_v16 = vld [vmem:[%s1332_s11] sm:$0xff]  ;;  %s410_s10 = sand.u32 1, %s1165_s26   ;;  %v400_v22 = vld [vmem:[%s1332_s11 + $0x8] sm:$0xff] }
 0x176   : > { %692 = dma.vmem_to_hbm [thread:$0]  (%p1549_p1), %s1342_s12, 128, %s1347_s9, %s406_s25, %s1078_s4, %s1079_s27, %s1080_s21  }
 0x177   : > { %s662_s14 = sshll.u32 %s1055_s22, 8  ;;  %s447_s30 = sshll.u32 %s1330_s6, 4  ;;  %s1391_s30 = int_to_ptr.vmem [resolvable:$true] %s447_s30 }
 0x178   : > { %s1386_s12 = scalar_lea.hbm %s1500_s3, %s662_s14  ;;  %s463_s9 = sshll.u32 %s1332_s11, 4  ;;  %s1400_s9 = int_to_ptr.vmem [resolvable:$true] %s463_s9 }
 0x179   : > { %s1550_s25 = sld [smem:[#allocation23_spill]]  ;;  %s1402_s13 = scalar_lea.sflag [#allocation9], %s410_s10 }
 0x17a   : > { %s909_s28 = scalar_lea.vmem %s1391_s30, 256  ;;  %p1552_p4 = scmp.ne.s32.totalorder %s1529_s8, 0 }
 0x17b   : > { %p910_p1 = scmp.ne.s32.totalorder %s1391_s30, %s909_s28  ;;  %s1081_s0 = smov [#allocation8]  }
 0x17c   : > { %s913_s4 = sshll.u32 %s1081_s0, 4  ;;  %s914_s4 = int_to_ptr.vmem [resolvable:$false] %s913_s4 }
 0x17d   : > { %p911_p6 = pnand %p910_p1, %p1552_p4  ;;  %s915_s21 = scalar_lea.vmem %s914_s4, 512 }
 0x17e   : > { %p916_p9 = scmp.lt.s32.totalorder %s1391_s30, %s914_s4  ;;  %p917_p13 = scmp.lt.s32.totalorder %s915_s21, %s909_s28 }
 0x17f   : > { %s1551_s29 = smov %s1550_s25  ;;  %s1398_s15 = scalar_lea.hbm %s1550_s25, %s662_s14 }
 0x180   : > { %p912_p11 = pneg %p911_p6  ;;  %p918_p10 = por %p917_p13, %p916_p9 }
 0x182   : > { %p919_p12 = pnand %p918_p10, %p912_p11 }
 0x1e8   : > { %v379_v15 = vpop.xlane.xlu0 %378 }
 0x1e9   : > { %v394_v17 = vadd.f32 %v392_v14, %v379_v15 }
 0x1ea   : > { %v387_v18 = vpop.xlane.xlu1 %386 }
 0x1eb   : > { %397 = vst.msk [vmem:[%s1330_s6] sm:$0xff] %vm396_vm4, %v394_v17  ;;  %v401_v20 = vadd.f32 %v399_v16, %v387_v18 }
 0x1ec   : > { %v381_v21 = vpop.xlane.xlu0 %380 }
 0x1ed   : > { %403 = vst.msk [vmem:[%s1332_s11] sm:$0xff] %vm396_vm4, %v401_v20  ;;  %v395_v23 = vadd.f32 %v393_v19, %v381_v21 }
 0x1ee   : > { %v389_v24 = vpop.xlane.xlu1 %388 }
 0x1ef   : > { %398 = vst.msk [vmem:[%s1330_s6 + $0x8] sm:$0xff] %vm396_vm4, %v395_v23  ;;  %v402_v25 = vadd.f32 %v400_v22, %v389_v24 }
 0x1f0   : > { %922 = shalt.err (!%p919_p12)
}
 0x1f1   : > { %s923_s6 = scalar_lea.hbm %s1386_s12, 256  ;;  %s927_s5 = scalar_lea.hbm %s1500_s3, 512 }
 0x1f2   : > { %p924_p2 = scmp.ne.s32.totalorder %s1386_s12, %s923_s6  ;;  %p928_p5 = scmp.lt.u32.totalorder %s1386_s12, %s1500_s3 }
 0x1f3   : > { %p929_p8 = scmp.lt.u32.totalorder %s927_s5, %s923_s6  ;;  %p931_p1 = scmp.lt.u32.totalorder %s923_s6, %s1386_s12 }
 0x1f4   : > { %p925_p3 = pnand %p924_p2, %p1552_p4 }
 0x1f5   : > { %p930_p0 = por %p929_p8, %p928_p5 }
 0x1f6   : > { %p926_p7 = pneg %p925_p3 }
 0x1f7   : > { %p932_p6 = por %p931_p1, %p930_p0 }
 0x1f9   : > { %p933_p11 = pnand %p932_p6, %p926_p7 }
 0x1fb   : > { %936 = shalt.err (!%p933_p11)
}
 0x1fc   : > { %s1082_s26 = smov 8   ;;  %404 = vst.msk [vmem:[%s1332_s11 + $0x8] sm:$0xff] %vm396_vm4, %v402_v25  ;;  %s937_s25 = scalar_lea.vmem %s1400_s9, 256 }
 0x1fd   : > { %693 = dma.vmem_to_hbm [thread:$0]  (%p1552_p4), %s1391_s30, 256, %s1386_s12, %s1402_s13, %s1079_s27, %s1079_s27, %s1082_s26  }
 0x1fe   : > { %p938_p9 = scmp.ne.s32.totalorder %s1400_s9, %s937_s25  ;;  %s1083_s28 = smov [#allocation10]  }
 0x1ff   : > { %s941_s0 = sshll.u32 %s1083_s28, 4  ;;  %s942_s0 = int_to_ptr.vmem [resolvable:$false] %s941_s0 }
 0x200   : > { %p939_p13 = pnand %p938_p9, %p1552_p4  ;;  %s943_s4 = scalar_lea.vmem %s942_s0, 512 }
 0x201   : > { %p944_p12 = scmp.lt.s32.totalorder %s1400_s9, %s942_s0  ;;  %p945_p2 = scmp.lt.s32.totalorder %s943_s4, %s937_s25 }
 0x202   : > { %p940_p10 = pneg %p939_p13 }
 0x203   : > { %p946_p3 = por %p945_p2, %p944_p12 }
 0x205   : > { %p947_p7 = pnand %p946_p3, %p940_p10 }
 0x207   : > { %950 = shalt.err (!%p947_p7)
}
 0x208   : > { %s951_s11 = scalar_lea.hbm %s1398_s15, 256  ;;  %s955_s21 = scalar_lea.hbm %s1551_s29, 512 }
 0x209   : > { %p952_p5 = scmp.ne.s32.totalorder %s1398_s15, %s951_s11  ;;  %p956_p1 = scmp.lt.u32.totalorder %s1398_s15, %s1551_s29 }
 0x20a   : > { %p957_p6 = scmp.lt.u32.totalorder %s955_s21, %s951_s11  ;;  %p959_p9 = scmp.lt.u32.totalorder %s951_s11, %s1398_s15 }
 0x20b   : > { %p953_p8 = pnand %p952_p5, %p1552_p4 }
 0x20c   : > { %p958_p11 = por %p957_p6, %p956_p1 }
 0x20d   : > { %p954_p0 = pneg %p953_p8 }
 0x20e   : > { %p960_p13 = por %p959_p9, %p958_p11 }
 0x210   : > { %p961_p10 = pnand %p960_p13, %p954_p0 }
 0x212   : > { %964 = shalt.err (!%p961_p10)
}
 0x213   : > { %694 = dma.vmem_to_hbm [thread:$0]  (%p1552_p4), %s1400_s9, 256, %s1398_s15, %s1402_s13, %s1079_s27, %s1079_s27, %s1082_s26  }
 0x214 PF: > { %s1553_s14 = sld [smem:[#allocation17_spill]]  ;;  %s1554_s5 = sld [smem:[#allocation15_spill]] }
 0x215   : > { %s1555_s18 = sld [smem:[#allocation18_spill]] }
 0x21a   : > { %p719_p12 = scmp.ge.s32.totalorder %s1553_s14, 2  ;;  %s478_s22 = sand.u32 1, %s1554_s5  }
 0x21b   : > { %p1556_p2 = scmp.ne.s32.totalorder %s1555_s18, 0  ;;  %s479_s25 = scalar_lea.sflag [#allocation4], %s478_s22 }
 0x21d   : > { %p707_p3 = pnand %p719_p12, %p1556_p2 }
 0x21f   : > { %1018 = dma.done.wait (!%p707_p3), %s479_s25, 128  }
 0x220   : > { %1020 = vsyncadd (!%p707_p3), %s479_s25, 4294967168  ;;  %s1557_s8 = sadd.s32 4294967294, %s1553_s14   ;;  %s1558_s28 = sld [smem:[#allocation19_spill]] }
 0x221   : > { %s487_s0 = sand.u32 1, %s1557_s8  }
 0x222   : > { %s488_s4 = scalar_lea.sflag [#allocation9], %s487_s0 }
 0x226   : > { %p1559_p7 = scmp.ne.s32.totalorder %s1558_s28, 0 }
 0x228   : > { %p710_p5 = pnand %p719_p12, %p1559_p7 }
 0x22a   : > { %1022 = dma.done.wait (!%p710_p5), %s488_s4, 512  }
 0x22b   : > { %1024 = vsyncadd (!%p710_p5), %s488_s4, 4294966784  ;;  %s25_s25 = sadd.s32 1, %s1553_s14   ;;  %s1560_s21 = sld [smem:[#allocation16_spill]] }
 0x22c   : > { %p22_p4 = scmp.ge.s32.totalorder %s25_s25, 6   ;;  %s1561_s27 = sld [smem:[#allocation20_spill]] }
 0x22d   : > { %s1562_s9 = sld [smem:[#allocation21_spill]]  ;;  %s1563_s15 = smov %s1031_s16 }
 0x22e   : > { %s1564_s16 = smov %s1035_s17  ;;  %s1565_s17 = smov %s1275_s7 }
 0x22f   : > { %s1566_s18 = smov %s1043_s19  ;;  %s1567_s19 = smov %s1047_s20 }
 0x230   : > { %s1568_s20 = smov %s1280_s23  ;;  %s1569_s22 = smov %s1063_s24 }
 0x231   :  { %24 = sbr.rel (!%p22_p4) target bundleno = 15 (0xf), region = 114 }
 0x232   : > { %s1570_s23 = smov %s1561_s27 }
 0x233   : > { %s1571_s24 = smov %s1562_s9 }
 0x238   :  { %502 = vsyncpa [#allocation3], 1 }
 0x239   :  { %504 = vsyncpa [#allocation3 + $0x1], 1 }
 0x23a   :  { %505 = vsyncpa [#allocation6], 1 }
 0x23b   :  { %507 = vsyncpa [#allocation6 + $0x1], 1 }
 0x23c   :  { %508 = vsyncpa [#allocation4], 1 }
 0x23d   :  { %510 = vsyncpa [#allocation4 + $0x1], 1 }
 0x23e   :  { %511 = vsyncpa [#allocation9], 1 }
 0x23f   :  { %513 = vsyncpa [#allocation9 + $0x1], 1 }

</bundles_post_ra>
